<compile_context>
chip_gen: v6e
topology: v6e:2x2x1
jax: 0.10.0
libtpu: 0.0.40
codegen_flags: <defaults>
</compile_context>

<pallas_src>
import functools

import jax
import jax.numpy as jnp
from jax.experimental import pallas as pl
from jax.experimental.pallas import tpu as pltpu

_HIDDEN = (32, 64, 128)
_LANE = 128
_SUBLANE = 8


def _round_up(x, m):
    return (x + m - 1) // m * m


def _leaky_relu(x, slope=0.2):
    # maximum(x, 0.2*x) == LeakyReLU(0.2) for slope in (0, 1).
    return jnp.maximum(x, slope * x)


def generator_kernel(x_ref,
                     w1_ref, b1_ref,
                     w2_ref, b2_ref,
                     w3_ref, b3_ref,
                     w4_ref, b4_ref,
                     out_ref):
    """Fused 4-layer MLP: bf16 matmuls (f32 accumulate) on MXU, f32 activations."""
    h = jnp.dot(x_ref[...], w1_ref[...],
                preferred_element_type=jnp.float32) + b1_ref[...]
    h = _leaky_relu(h)
    # dropout (p=0.3): identity in eval mode

    h = jnp.dot(h.astype(jnp.bfloat16), w2_ref[...],
                preferred_element_type=jnp.float32) + b2_ref[...]
    h = _leaky_relu(h)

    h = jnp.dot(h.astype(jnp.bfloat16), w3_ref[...],
                preferred_element_type=jnp.float32) + b3_ref[...]
    h = _leaky_relu(h)

    h = jnp.dot(h.astype(jnp.bfloat16), w4_ref[...],
                preferred_element_type=jnp.float32) + b4_ref[...]
    out_ref[...] = jnp.tanh(h)


def init_generator_params(key, in_features, out_features):
    """PyTorch-style Linear init: U(-1/sqrt(fan_in), 1/sqrt(fan_in)).

    Weights are returned transposed to (in, out) for x @ W; biases are (1, out).
    """
    dims = [in_features, *_HIDDEN, out_features]
    params = []
    keys = jax.random.split(key, 2 * (len(dims) - 1))
    for layer in range(len(dims) - 1):
        fan_in, fan_out = dims[layer], dims[layer + 1]
        bound = 1.0 / (fan_in ** 0.5)
        w = jax.random.uniform(keys[2 * layer], (fan_in, fan_out),
                               minval=-bound, maxval=bound, dtype=jnp.float32)
        b = jax.random.uniform(keys[2 * layer + 1], (1, fan_out),
                               minval=-bound, maxval=bound, dtype=jnp.float32)
        params.append((w, b))
    return params


@functools.partial(jax.jit, static_argnames=("out_features", "block_batch"))
def generator_forward(x, params, out_features, block_batch=256):
    batch, in_features = x.shape
    out_pad = _round_up(out_features, _LANE)

    # bf16 MXU operands, f32 biases; pad last layer to a lane-dense (128x)
    # output so the final store is an unmasked full-lane vst.
    flat = []
    for i, (w, b) in enumerate(params):
        if i == len(params) - 1 and w.shape[1] != out_pad:
            w = jnp.pad(w, ((0, 0), (0, out_pad - w.shape[1])))
            b = jnp.pad(b, ((0, 0), (0, out_pad - b.shape[1])))
        flat.append(w.astype(jnp.bfloat16))
        flat.append(b.astype(jnp.float32))

    # Batch tile: multiple of 8 sublanes, capped at block_batch; pad batch up.
    tb = min(block_batch, _round_up(batch, _SUBLANE))
    pb = _round_up(batch, tb)
    xb = x.astype(jnp.bfloat16)
    if pb != batch:
        xb = jnp.pad(xb, ((0, pb - batch), (0, 0)))

    grid = (pb // tb,)

    in_specs = [pl.BlockSpec((tb, in_features), lambda i: (i, 0))]
    for t in flat:
        # Constant block index -> weights/biases stay VMEM-resident (no re-DMA).
        in_specs.append(pl.BlockSpec(t.shape, lambda i: (0, 0)))
    out_spec = pl.BlockSpec((tb, out_pad), lambda i: (i, 0))

    dims = [in_features, *_HIDDEN, out_pad]
    flops = 2 * pb * sum(a * b for a, b in zip(dims[:-1], dims[1:]))
    bytes_accessed = (xb.size * xb.dtype.itemsize
                      + sum(t.size * t.dtype.itemsize for t in flat)
                      + pb * out_pad * 4)
    cost = pl.CostEstimate(flops=flops,
                           transcendentals=pb * out_pad,
                           bytes_accessed=bytes_accessed)

    out = pl.pallas_call(
        generator_kernel,
        out_shape=jax.ShapeDtypeStruct((pb, out_pad), jnp.float32),
        grid=grid,
        in_specs=in_specs,
        out_specs=out_spec,
        compiler_params=pltpu.CompilerParams(
            dimension_semantics=("parallel",)),
        cost_estimate=cost,
    )(xb, *flat)

    return out[:batch, :out_features]


if __name__ == "__main__":
    # Small shapes consistent with the module: latent 16 -> output 64.
    # batch=32 with block_batch=8 exercises a 4-step pipelined grid.
    batch = 32
    in_features = 16
    out_features = 64

    key = jax.random.PRNGKey(0)
    key_x, key_p = jax.random.split(key)

    x = jax.random.normal(key_x, (batch, in_features), dtype=jnp.float32)
    params = init_generator_params(key_p, in_features, out_features)

    out = generator_forward(x, params, out_features=out_features, block_batch=8)
    out = jax.block_until_ready(out)

    # Pure-JAX reference mirroring the kernel's dtype strategy
    # (bf16 MXU operands, f32 accumulation/activations).
    def ref_forward(x, params):
        h = x.astype(jnp.bfloat16)
        for i, (w, b) in enumerate(params):
            h = jnp.dot(h, w.astype(jnp.bfloat16),
                        preferred_element_type=jnp.float32) + b
            if i < len(params) - 1:
                h = jnp.maximum(h, 0.2 * h).astype(jnp.bfloat16)
        return jnp.tanh(h)

    ref = ref_forward(x, params)
    assert out.shape == (batch, out_features)
    assert jnp.allclose(out, ref, atol=2e-3, rtol=2e-3), (
        float(jnp.max(jnp.abs(out - ref))))

    print("KERNEL_OK")
</pallas_src>

<mosaic_0001>
module attributes {stable_mosaic.version = 11 : i64} {
  func.func @generator_kernel(%arg0: i32, %arg1: memref<8x16xbf16, #tpu.memory_space<vmem>>, %arg2: memref<16x32xbf16, #tpu.memory_space<vmem>>, %arg3: memref<1x32xf32, #tpu.memory_space<vmem>>, %arg4: memref<32x64xbf16, #tpu.memory_space<vmem>>, %arg5: memref<1x64xf32, #tpu.memory_space<vmem>>, %arg6: memref<64x128xbf16, #tpu.memory_space<vmem>>, %arg7: memref<1x128xf32, #tpu.memory_space<vmem>>, %arg8: memref<128x128xbf16, #tpu.memory_space<vmem>>, %arg9: memref<1x128xf32, #tpu.memory_space<vmem>>, %arg10: memref<8x128xf32, #tpu.memory_space<vmem>>) attributes {dimension_semantics = [#tpu.dimension_semantics<parallel>], iteration_bounds = array<i64: 4>, scalar_prefetch = 0 : i64, scratch_operands = 0 : i64, tpu.core_type = #tpu.core_type<tc>, window_params = [{transform_indices = @transform_0, window_bounds = array<i64: 8, 16>}, {pipeline_mode = #tpu.pipeline_mode<synchronous>, transform_indices = @transform_1, window_bounds = array<i64: 16, 32>}, {pipeline_mode = #tpu.pipeline_mode<synchronous>, transform_indices = @transform_2, window_bounds = array<i64: 1, 32>}, {pipeline_mode = #tpu.pipeline_mode<synchronous>, transform_indices = @transform_3, window_bounds = array<i64: 32, 64>}, {pipeline_mode = #tpu.pipeline_mode<synchronous>, transform_indices = @transform_4, window_bounds = array<i64: 1, 64>}, {pipeline_mode = #tpu.pipeline_mode<synchronous>, transform_indices = @transform_5, window_bounds = array<i64: 64, 128>}, {pipeline_mode = #tpu.pipeline_mode<synchronous>, transform_indices = @transform_6, window_bounds = array<i64: 1, 128>}, {pipeline_mode = #tpu.pipeline_mode<synchronous>, transform_indices = @transform_7, window_bounds = array<i64: 128, 128>}, {pipeline_mode = #tpu.pipeline_mode<synchronous>, transform_indices = @transform_8, window_bounds = array<i64: 1, 128>}, {transform_indices = @transform_9, window_bounds = array<i64: 8, 128>}]} {
    %c0 = arith.constant 0 : index
    %c0_0 = arith.constant 0 : index
    %0 = vector.load %arg1[%c0, %c0_0] : memref<8x16xbf16, #tpu.memory_space<vmem>>, vector<8x16xbf16>
    %c0_1 = arith.constant 0 : index
    %c0_2 = arith.constant 0 : index
    %1 = vector.load %arg2[%c0_1, %c0_2] : memref<16x32xbf16, #tpu.memory_space<vmem>>, vector<16x32xbf16>
    %cst = arith.constant dense<0.000000e+00> : vector<8x32xf32>
    %2 = tpu.matmul %0, %1, %cst {dimension_numbers = #tpu.dot_dimension_numbers<[1], [0], [0], [1], [0, 0, 1, 1], [], []>} : vector<8x16xbf16>, vector<16x32xbf16>, vector<8x32xf32> -> vector<8x32xf32>
    %c0_3 = arith.constant 0 : index
    %c0_4 = arith.constant 0 : index
    %3 = vector.load %arg3[%c0_3, %c0_4] : memref<1x32xf32, #tpu.memory_space<vmem>>, vector<1x32xf32>
    %4 = vector.broadcast %3 : vector<1x32xf32> to vector<8x32xf32>
    %5 = arith.addf %2, %4 : vector<8x32xf32>
    %cst_5 = arith.constant 2.000000e-01 : f32
    %6 = vector.broadcast %cst_5 : f32 to vector<8x32xf32>
    %7 = arith.mulf %6, %5 : vector<8x32xf32>
    %8 = arith.maximumf %5, %7 : vector<8x32xf32>
    %9 = arith.truncf %8 : vector<8x32xf32> to vector<8x32xbf16>
    %c0_6 = arith.constant 0 : index
    %c0_7 = arith.constant 0 : index
    %10 = vector.load %arg4[%c0_6, %c0_7] : memref<32x64xbf16, #tpu.memory_space<vmem>>, vector<32x64xbf16>
    %cst_8 = arith.constant dense<0.000000e+00> : vector<8x64xf32>
    %11 = tpu.matmul %9, %10, %cst_8 {dimension_numbers = #tpu.dot_dimension_numbers<[1], [0], [0], [1], [0, 0, 1, 1], [], []>} : vector<8x32xbf16>, vector<32x64xbf16>, vector<8x64xf32> -> vector<8x64xf32>
    %c0_9 = arith.constant 0 : index
    %c0_10 = arith.constant 0 : index
    %12 = vector.load %arg5[%c0_9, %c0_10] : memref<1x64xf32, #tpu.memory_space<vmem>>, vector<1x64xf32>
    %13 = vector.broadcast %12 : vector<1x64xf32> to vector<8x64xf32>
    %14 = arith.addf %11, %13 : vector<8x64xf32>
    %cst_11 = arith.constant 2.000000e-01 : f32
    %15 = vector.broadcast %cst_11 : f32 to vector<8x64xf32>
    %16 = arith.mulf %15, %14 : vector<8x64xf32>
    %17 = arith.maximumf %14, %16 : vector<8x64xf32>
    %18 = arith.truncf %17 : vector<8x64xf32> to vector<8x64xbf16>
    %c0_12 = arith.constant 0 : index
    %c0_13 = arith.constant 0 : index
    %19 = vector.load %arg6[%c0_12, %c0_13] : memref<64x128xbf16, #tpu.memory_space<vmem>>, vector<64x128xbf16>
    %cst_14 = arith.constant dense<0.000000e+00> : vector<8x128xf32>
    %20 = tpu.matmul %18, %19, %cst_14 {dimension_numbers = #tpu.dot_dimension_numbers<[1], [0], [0], [1], [0, 0, 1, 1], [], []>} : vector<8x64xbf16>, vector<64x128xbf16>, vector<8x128xf32> -> vector<8x128xf32>
    %c0_15 = arith.constant 0 : index
    %c0_16 = arith.constant 0 : index
    %21 = vector.load %arg7[%c0_15, %c0_16] : memref<1x128xf32, #tpu.memory_space<vmem>>, vector<1x128xf32>
    %22 = vector.broadcast %21 : vector<1x128xf32> to vector<8x128xf32>
    %23 = arith.addf %20, %22 : vector<8x128xf32>
    %cst_17 = arith.constant 2.000000e-01 : f32
    %24 = vector.broadcast %cst_17 : f32 to vector<8x128xf32>
    %25 = arith.mulf %24, %23 : vector<8x128xf32>
    %26 = arith.maximumf %23, %25 : vector<8x128xf32>
    %27 = arith.truncf %26 : vector<8x128xf32> to vector<8x128xbf16>
    %c0_18 = arith.constant 0 : index
    %c0_19 = arith.constant 0 : index
    %28 = vector.load %arg8[%c0_18, %c0_19] : memref<128x128xbf16, #tpu.memory_space<vmem>>, vector<128x128xbf16>
    %cst_20 = arith.constant dense<0.000000e+00> : vector<8x128xf32>
    %29 = tpu.matmul %27, %28, %cst_20 {dimension_numbers = #tpu.dot_dimension_numbers<[1], [0], [0], [1], [0, 0, 1, 1], [], []>} : vector<8x128xbf16>, vector<128x128xbf16>, vector<8x128xf32> -> vector<8x128xf32>
    %c0_21 = arith.constant 0 : index
    %c0_22 = arith.constant 0 : index
    %30 = vector.load %arg9[%c0_21, %c0_22] : memref<1x128xf32, #tpu.memory_space<vmem>>, vector<1x128xf32>
    %31 = vector.broadcast %30 : vector<1x128xf32> to vector<8x128xf32>
    %32 = arith.addf %29, %31 : vector<8x128xf32>
    %33 = math.tanh %32 : vector<8x128xf32>
    %c0_23 = arith.constant 0 : index
    %c0_24 = arith.constant 0 : index
    %34 = vector.load %arg10[%c0_23, %c0_24] : memref<8x128xf32, #tpu.memory_space<vmem>>, vector<8x128xf32>
    tpu.vector_store %arg10[%c0_23, %c0_24], %33 {strides = array<i32>} : memref<8x128xf32, #tpu.memory_space<vmem>>, vector<8x128xf32>,
    return
  }
  func.func @transform_0(%arg0: i32) -> (i32, i32) {
    %c0_i32 = arith.constant 0 : i32
    %c0_i32_0 = arith.constant 0 : i32
    return %arg0, %c0_i32 : i32, i32
  }
  func.func @transform_1(%arg0: i32) -> (i32, i32) {
    %c0_i32 = arith.constant 0 : i32
    %c0_i32_0 = arith.constant 0 : i32
    %c0_i32_1 = arith.constant 0 : i32
    return %c0_i32, %c0_i32_0 : i32, i32
  }
  func.func @transform_2(%arg0: i32) -> (i32, i32) {
    %c0_i32 = arith.constant 0 : i32
    %c0_i32_0 = arith.constant 0 : i32
    %c0_i32_1 = arith.constant 0 : i32
    return %c0_i32, %c0_i32_0 : i32, i32
  }
  func.func @transform_3(%arg0: i32) -> (i32, i32) {
    %c0_i32 = arith.constant 0 : i32
    %c0_i32_0 = arith.constant 0 : i32
    %c0_i32_1 = arith.constant 0 : i32
    return %c0_i32, %c0_i32_0 : i32, i32
  }
  func.func @transform_4(%arg0: i32) -> (i32, i32) {
    %c0_i32 = arith.constant 0 : i32
    %c0_i32_0 = arith.constant 0 : i32
    %c0_i32_1 = arith.constant 0 : i32
    return %c0_i32, %c0_i32_0 : i32, i32
  }
  func.func @transform_5(%arg0: i32) -> (i32, i32) {
    %c0_i32 = arith.constant 0 : i32
    %c0_i32_0 = arith.constant 0 : i32
    %c0_i32_1 = arith.constant 0 : i32
    return %c0_i32, %c0_i32_0 : i32, i32
  }
  func.func @transform_6(%arg0: i32) -> (i32, i32) {
    %c0_i32 = arith.constant 0 : i32
    %c0_i32_0 = arith.constant 0 : i32
    %c0_i32_1 = arith.constant 0 : i32
    return %c0_i32, %c0_i32_0 : i32, i32
  }
  func.func @transform_7(%arg0: i32) -> (i32, i32) {
    %c0_i32 = arith.constant 0 : i32
    %c0_i32_0 = arith.constant 0 : i32
    %c0_i32_1 = arith.constant 0 : i32
    return %c0_i32, %c0_i32_0 : i32, i32
  }
  func.func @transform_8(%arg0: i32) -> (i32, i32) {
    %c0_i32 = arith.constant 0 : i32
    %c0_i32_0 = arith.constant 0 : i32
    %c0_i32_1 = arith.constant 0 : i32
    return %c0_i32, %c0_i32_0 : i32, i32
  }
  func.func @transform_9(%arg0: i32) -> (i32, i32) {
    %c0_i32 = arith.constant 0 : i32
    %c0_i32_0 = arith.constant 0 : i32
    return %arg0, %c0_i32 : i32, i32
  }
}

</mosaic_0001>

<bundles_post_ra>
// kernel: generator_forward.1
= control target key start
LH: loop header
LB: loop body
LE: loop exit
PB: predicated region body
PF: predicated region fallthrough
CT: control target
= control target key end

     0   :  { %14 = vsyncpa [#allocation3], 0  ;;  %s1177_s0 = inlined_call_operand.vmem [shape: bf16[32,16], index: 0, kind: input, shape index: {}]   ;;  %s1178_s1 = inlined_call_operand.vmem [shape: bf16[16,32], index: 1, kind: input, shape index: {}]   ;;  %s1179_s2 = inlined_call_operand.vmem [shape: f32[1,32], index: 2, kind: input, shape index: {}]   ;;  %s1180_s3 = inlined_call_operand.vmem [shape: bf16[32,64], index: 3, kind: input, shape index: {}]   ;;  %s1181_s4 = inlined_call_operand.vmem [shape: f32[1,64], index: 4, kind: input, shape index: {}]   ;;  %s1182_s5 = inlined_call_operand.vmem [shape: bf16[64,128], index: 5, kind: input, shape index: {}]   ;;  %s1183_s6 = inlined_call_operand.vmem [shape: f32[1,128], index: 6, kind: input, shape index: {}]   ;;  %s1184_s7 = inlined_call_operand.vmem [shape: bf16[128,128], index: 7, kind: input, shape index: {}]   ;;  %s1185_s8 = inlined_call_operand.vmem [shape: f32[1,128], index: 8, kind: input, shape index: {}]   ;;  %s1186_s9 = inlined_call_operand.hbm [shape: f32[32,128], index: 9, kind: output, shape index: {}]  }
   0x1   :  { %16 = vsyncpa [#allocation3 + $0x1], 0  ;;  %s1004_s30 = smov 0   ;;  %s1006_s10 = smov 0  }
   0x2   :  { %s1008_s11 = smov 0   ;;  %s1010_s12 = smov 0  }
   0x3 LB: > { %s1025_s13 = sadd.s32 4294967295, %s949_s12   ;;  %s734_s14 = sadd.s32 4294967294, %s949_s12   ;;  %s949_s12 = sphi %s1010_s12, %s1192_s12   ;;  %s945_s11 = sphi %s1008_s11, %s1191_s11   ;;  %s941_s10 = sphi %s1006_s10, %s1190_s10   ;;  %s937_s30 = sphi %s1004_s30, %s1189_s30  }
   0x4   : > { %s1029_s15 = sadd.s32 1, %s949_s12   ;;  %s223_s16 = sadd.s32 1, %s945_s11 }
   0x5   : > { %s220_s17 = ssub.s32 %s949_s12, %s1029_s15  ;;  %p233_p0 = scmp.ne.s32.totalorder %s945_s11, %s941_s10 }
   0x6   : > { %p221_p1 = scmp.eq.s32.totalorder %s220_s17, 0  ;;  %p234_p2 = scmp.eq.s32.totalorder %s1025_s13, 3 }
   0x7   : > { %p239_p3 = scmp.ne.s32.totalorder %s941_s10, %s937_s30  ;;  %p240_p4 = scmp.eq.s32.totalorder %s734_s14, 3 }
   0x8   : > { %s1040_s18 = scalar_select %p221_p1, %s945_s11, %s223_s16  }
   0x9   : > { %p1042_p5 = por %p234_p2, %p233_p0  ;;  %p1046_p6 = por %p240_p4, %p239_p3 }
   0xa   : > { %p737_p7 = scmp.ge.s32.totalorder %s949_s12, 1  ;;  %p289_p8 = scmp.lt.s32.totalorder %s949_s12, 5 }
   0xc   : > { %p290_p9 = pnand %p737_p7, %p289_p8 }
   0xd   : > { %p324_p10 = scmp.lt.s32.totalorder (!%p290_p9), %s1025_s13, 3  ;;  %s321_s28 = sand.u32 (!%p290_p9), 1, %s941_s10  }
   0xe   : > { %293 = sbr.rel (%p290_p9) target bundleno = 849 (0x351), region = 56  ;;  %s738_s29 = sshll.u32 (!%p290_p9), %s321_s28, 3 }
   0xf   : > { %s763_s14 = sshll.u32 (!%p290_p9), %s1025_s13, 7  ;;  %s323_s16 = scalar_lea.vmem (!%p290_p9), [#allocation2], %s738_s29 }
  0x10   : > { %s675_s17 = sshll.u32 (!%p290_p9), %s323_s16, 4  ;;  %s953_s26 = smov (!%p290_p9), [#allocation2]   ;;  %s676_s17 = int_to_ptr.vmem [resolvable:$true] %s675_s17 }
  0x11   : > { %s889_s25 = scalar_lea.vmem (!%p290_p9), %s676_s17, 128 }
  0x12   : > { %p890_p11 = scmp.ne.s32.totalorder (!%p290_p9), %s676_s17, %s889_s25 }
  0x13   : > { %v872_v0 = vld [vmem:[%s1178_s1] sm:$0xff]   ;;  %v951_v1 = vmov 0.0   ;;  %vm952_vm0 = vmmov 0   ;;  %s325_s23 = scalar_select %p324_p10, %s1025_s13, 3  ;;  %vm345_vm1 = vcmask 130048   ;;  %v873_v3 = vld [vmem:[%s1180_s3 + $0x8] sm:$0xff]  }
  0x14   : > { %785 = vmatprep.subr.bf16.mxu0 %v951_v1  ;;  %811 = vmatprep.subr.bf16.mxu1 %v951_v1  ;;  %v874_v4 = vld [vmem:[%s1180_s3] sm:$0xff]   ;;  %vm415_vm2 = vcmask 261120   ;;  %v875_v13 = vld [vmem:[%s1182_s5 + $0x18] sm:$0xff]   ;;  %v876_v15 = vld [vmem:[%s1182_s5 + $0x10] sm:$0xff]   ;;  %vm501_vm3 = vcmask 523264   ;;  %p891_p12 = pnand %p890_p11, %p1042_p5 }
  0x15   : > { %786 = vmatpush3.bf16.msra.mxu0 %v872_v0  ;;  %787 = vmatprep.mubr.msk.bf16.mxu0 %vm952_vm0, %v951_v1  ;;  %s739_s24 = sshll.u32 %s325_s23, 2  ;;  %v740_v5 = vld [vmem:[%s1179_s2] ss:$0 sm:$0xff]  ;;  %v877_v16 = vld [vmem:[%s1182_s5 + $0x8] sm:$0xff]   ;;  %v879_v18 = vld [vmem:[%s1184_s7 + $0x38] sm:$0xff]   ;;  %s1142_s23 = scalar_lea.hbm %s1186_s9, %s763_s14 }
  0x16   : > { %791 = vmatprep.subr.bf16.mxu0 %v951_v1  ;;  %827 = vmatprep.mubr.msk.bf16.mxu1 %vm952_vm0, %v951_v1  ;;  %s327_s27 = scalar_lea.vmem %s1177_s0, %s739_s24  ;;  %v878_v17 = vld [vmem:[%s1182_s5] sm:$0xff]   ;;  %v880_v19 = vld [vmem:[%s1184_s7 + $0x30] sm:$0xff]   ;;  %v881_v20 = vld [vmem:[%s1184_s7 + $0x28] sm:$0xff]   ;;  %s662_s24 = scalar_lea.sflag [#allocation3], %s321_s28 }
  0x17   : > { %v329_v2 = vld [vmem:[%s327_s27] sm:$0xf]  ;;  %812 = vmatpush3.bf16.msra.mxu1 %v879_v18  ;;  %v883_v22 = vld [vmem:[%s1184_s7 + $0x18] sm:$0xff]   ;;  %v884_v23 = vld [vmem:[%s1184_s7 + $0x10] sm:$0xff]   ;;  %p892_p13 = pneg %p891_p12  ;;  %s893_s27 = sshll.u32 %s953_s26, 4  ;;  %s894_s27 = int_to_ptr.vmem [resolvable:$false] %s893_s27 }
  0x18   : > { %788 = vmatmul.mubr.msk.bf16.vlgmr.msra.gmra.mxu0 %vm345_vm1, %v329_v2  ;;  %813 = vmatprep.subr.bf16.mxu1 %v951_v1  ;;  %v882_v21 = vld [vmem:[%s1184_s7 + $0x20] sm:$0xff]   ;;  %v885_v33 = vld [vmem:[%s1184_s7 + $0x8] sm:$0xff]   ;;  %s895_s13 = scalar_lea.vmem %s894_s27, 256  ;;  %p896_p0 = scmp.lt.s32.totalorder %s676_s17, %s894_s27 }
  0x19   : > { %795 = vmatprep.mubr.msk.bf16.mxu0 %vm952_vm0, %v951_v1  ;;  %792 = vmatpush3.bf16.msra.mxu0 %v873_v3  ;;  %v743_v24 = vld [vmem:[%s1181_s4] ss:$0 sm:$0xff]  ;;  %p897_p1 = scmp.lt.s32.totalorder %s895_s13, %s889_s25 }
  0x1a   : > { %793 = vmatprep.subr.bf16.mxu0 %v951_v1  ;;  %v886_v34 = vld [vmem:[%s1184_s7] sm:$0xff]  }
  0x1b   : > { %814 = vmatpush3.bf16.msra.mxu1 %v880_v19  ;;  %v747_v35 = vld [vmem:[%s1183_s6] ss:$0 sm:$0xff]  ;;  %p898_p2 = por %p897_p1, %p896_p0 }
  0x1c   : > { %815 = vmatprep.subr.bf16.mxu1 %v951_v1  ;;  %v753_v44 = vld [vmem:[%s1185_s8] ss:$0 sm:$0xff] }
  0x1d   : > { %794 = vmatpush3.bf16.msra.mxu0 %v874_v4  ;;  %p899_p3 = pnand %p898_p2, %p892_p13 }
  0x1e   : > { %799 = vmatprep.subr.bf16.mxu0 %v951_v1 }
  0x1f   : > { %816 = vmatpush3.bf16.msra.mxu1 %v881_v20 }
  0x20   : > { %817 = vmatprep.subr.bf16.mxu1 %v951_v1 }
  0x23   : > { %818 = vmatpush3.bf16.msra.mxu1 %v882_v21 }
  0x24   : > { %819 = vmatprep.subr.bf16.mxu1 %v951_v1 }
  0x27   : > { %820 = vmatpush3.bf16.msra.mxu1 %v883_v22 }
  0x28   : > { %821 = vmatprep.subr.bf16.mxu1 %v951_v1 }
  0x2b   : > { %822 = vmatpush3.bf16.msra.mxu1 %v884_v23 }
  0x2c   : > { %823 = vmatprep.subr.bf16.mxu1 %v951_v1 }
  0x2f   : > { %824 = vmatpush3.bf16.msra.mxu1 %v885_v33 }
  0x30   : > { %825 = vmatprep.subr.bf16.mxu1 %v951_v1 }
  0x33   : > { %826 = vmatpush3.bf16.msra.mxu1 %v886_v34 }
  0xd8   : > { %v383_v6 = vpop.f32.mrf.mxu0 }
  0xd9   : > { %v384_v7 = vadd.f32 %v740_v5, %v383_v6 }
  0xda   : > { %v789_v8 = vpop.f32.mrf.mxu0 }
  0xdb   : > { %v389_v9 = vmul.f32 0.2, %v384_v7 }
  0xdc   : > { %v386_v10 = vpop.f32.mrf.mxu0 }
  0xdd   : > { %v390_v11 = vmax.f32 %v384_v7, %v389_v9 }
  0xde   : > { %v790_v12 = vpop.f32.mrf.mxu0 }
  0xdf   : > { %v391_v14 = vpack.c.bf16 %v390_v11, %v390_v11 }
  0xe1   : > { %796 = vmatmul.mubr.msk.bf16.vlgmr.msra.gmra.mxu0 %vm415_vm2, %v391_v14 }
  0xe2   : > { %800 = vmatpush3.bf16.msra.mxu0 %v875_v13  ;;  %807 = vmatprep.mubr.msk.bf16.mxu0 %vm952_vm0, %v951_v1 }
  0xe3   : > { %801 = vmatprep.subr.bf16.mxu0 %v951_v1 }
  0xe6   : > { %802 = vmatpush3.bf16.msra.mxu0 %v876_v15 }
  0xe7   : > { %803 = vmatprep.subr.bf16.mxu0 %v951_v1 }
  0xea   : > { %804 = vmatpush3.bf16.msra.mxu0 %v877_v16 }
  0xeb   : > { %805 = vmatprep.subr.bf16.mxu0 %v951_v1 }
  0xee   : > { %806 = vmatpush3.bf16.msra.mxu0 %v878_v17 }
 0x1a1   : > { %v453_v25 = vpop.f32.mrf.mxu0 }
 0x1a2   : > { %v454_v26 = vadd.f32 %v743_v24, %v453_v25 }
 0x1a3   : > { %v797_v27 = vpop.f32.mrf.mxu0 }
 0x1a4   : > { %v459_v28 = vmul.f32 0.2, %v454_v26 }
 0x1a5   : > { %v456_v29 = vpop.f32.mrf.mxu0 }
 0x1a6   : > { %v460_v30 = vmax.f32 %v454_v26, %v459_v28 }
 0x1a7   : > { %v798_v31 = vpop.f32.mrf.mxu0 }
 0x1a8   : > { %v461_v32 = vpack.c.bf16 %v460_v30, %v460_v30 }
 0x1aa   : > { %808 = vmatmul.mubr.msk.bf16.vlgmr.msra.gmra.mxu0 %vm501_vm3, %v461_v32 }
 0x26a   : > { %v539_v36 = vpop.f32.mrf.mxu0 }
 0x26b   : > { %v540_v37 = vadd.f32 %v747_v35, %v539_v36 }
 0x26c   : > { %v809_v38 = vpop.f32.mrf.mxu0 }
 0x26d   : > { %v545_v39 = vmul.f32 0.2, %v540_v37 }
 0x26e   : > { %v542_v40 = vpop.f32.mrf.mxu0 }
 0x26f   : > { %v546_v41 = vmax.f32 %v540_v37, %v545_v39 }
 0x270   : > { %v810_v42 = vpop.f32.mrf.mxu0 }
 0x271   : > { %v547_v43 = vpack.c.bf16 %v546_v41, %v546_v41 }
 0x273   : > { %828 = vmatmul.mubr.bf16.vlgmr.msra.gmra.mxu1 %v547_v43 }
 0x333   : > { %v653_v45 = vpop.f32.mrf.mxu1 }
 0x334   : > { %v654_v46 = vadd.f32 %v753_v44, %v653_v45 }
 0x335   : > { %v829_v47 = vpop.f32.mrf.mxu1 }
 0x336   : > { %887 = vtanh.f32 %v654_v46 }
 0x337   : > { %v656_v48 = vpop.f32.mrf.mxu1 }
 0x339   : > { %v830_v49 = vpop.f32.mrf.mxu1 }
 0x343   : > { %v888_v50 = vpop.eup %887 }
 0x344   : > { %660 = vst [vmem:[%s323_s16] sm:$0xff] %v888_v50 }
 0x345   : > { %902 = shalt.err (!%p899_p3)
}
 0x346   : > { %s903_s29 = scalar_lea.hbm %s1142_s23, 128  ;;  %s907_s16 = scalar_lea.hbm %s1186_s9, 512 }
 0x347   : > { %p904_p4 = scmp.ne.s32.totalorder %s1142_s23, %s903_s29  ;;  %p908_p9 = scmp.lt.s32.totalorder %s1142_s23, %s1186_s9 }
 0x348   : > { %p909_p10 = scmp.lt.s32.totalorder %s907_s16, %s903_s29 }
 0x349   : > { %p905_p7 = pnand %p904_p4, %p1042_p5 }
 0x34a   : > { %p910_p11 = por %p909_p10, %p908_p9 }
 0x34b   : > { %p906_p8 = pneg %p905_p7 }
 0x34d   : > { %p911_p12 = pnand %p910_p11, %p906_p8 }
 0x34f   : > { %914 = shalt.err (!%p911_p12)
}
 0x350   : > { %831 = dma.vmem_to_hbm [thread:$0]  (%p1042_p5), %s676_s17, 128, %s1142_s23, %s662_s24  }
 0x351 PF: > { %p837_p13 = scmp.ge.s32.totalorder %s949_s12, 2  ;;  %s687_s25 = sand.u32 1, %s937_s30  }
 0x352   : > { %s688_s26 = scalar_lea.sflag [#allocation3], %s687_s25 }
 0x353   : > { %p834_p0 = pnand %p837_p13, %p1046_p6 }
 0x355   : > { %p835_p1 = pneg %p834_p0 }
 0x357   : > { %932 = dma.done.wait (%p835_p1), %s688_s26, 128  }
 0x358   : > { %934 = vsyncadd (%p835_p1), %s688_s26, 4294967168  ;;  %p19_p2 = scmp.ge.s32.totalorder %s1029_s15, 6   ;;  %s1189_s30 = smov %s941_s10 }
 0x359   : > { %s1190_s10 = smov %s945_s11  ;;  %s1191_s11 = smov %s1040_s18 }
 0x35a   : > { %s1192_s12 = smov %s1029_s15  ;;  %21 = sbr.rel (!%p19_p2) target bundleno = 3 (0x3), region = 91 }
 0x35f   :  { %693 = vsyncpa [#allocation3], 1 }
 0x360   :  { %695 = vsyncpa [#allocation3 + $0x1], 1 }

</bundles_post_ra>
